<compile_context>
chip_gen: v6e
topology: v6e:2x2x1
jax: 0.10.0
libtpu: 0.0.40
codegen_flags: <defaults>
</compile_context>

<pallas_src>
import functools
import math

import numpy as np
import jax
import jax.numpy as jnp
from jax.experimental import pallas as pl
from jax.experimental.pallas import tpu as pltpu


# ---------------------------------------------------------------------------
# Fault eta table (verbatim from the torch module), shape [18, 4].
# ---------------------------------------------------------------------------
ETA_FAULT = jnp.array(
    [[0.83907, -1.0, 0.0, 2.0978e-17],
     [-0.60647, -1.0, 0.0, 1.0867e-08],
     [-0.99992, -1.0, 0.0, -4.5596e-18],
     [0.83907, -1.0, 0.0, -1.8533e-17],
     [31.485, 0.0028551, -0.09998, 6.3016],
     [-1.0, -1.0, 0.0, 4.407e-16],
     [183.07, -183.94, -83.575, 0.042966],
     [-0.60647, -1.0, 0.0, 1.0867e-08],
     [0.12159, -0.73578, -0.079441, 3.109],
     [0.83907, -1.0, 0.0, 2.0978e-17],
     [-0.99992, -1.0, 0.0, -4.5596e-18],
     [0.76517, -0.0080291, 0.63714, 1.2184],
     [0.83907, -1.0, 0.0, 2.0978e-17],
     [0.83907, -1.0, 0.0, -1.8533e-17],
     [-1.0, -1.0, 0.0, 4.407e-16],
     [1.0, -1.0, 0.0, 4.4982e-16],
     [-0.045913, -0.72633, 0.073493, 10.507],
     [-0.99992, -1.0, 0.0, -4.5596e-18]], dtype=jnp.float32)


# ---------------------------------------------------------------------------
# Pallas kernel: output_faults / output_variation elementwise hot path.
#   z tile:    (gb, B*D)                      -- lane-dense rows of (m,n) groups
#   coef:      resident (n_blocks, gb, 4*D) or block (gb, 4*D), planes
#              lane-concatenated as [e3 | e2*e3 | -e1 | -e0]
#   out tile:  (gb, B*D)
# ---------------------------------------------------------------------------
def _output_faults_kernel(z_ref, coef_ref, o_ref, *, feat, resident_coef):
    if resident_coef:
        # whole coef table is VMEM-resident; pick this grid step's row slab
        coef = coef_ref[pl.program_id(0)]                   # [gb, 4*D]
    else:
        coef = coef_ref[...]                                # [gb, 4*D]
    z = z_ref[...]                                          # [gb, B*D]
    reps = z_ref.shape[1] // feat                           # = B (static)
    # z rows are b-major / d-minor (from z.reshape(M*N, B*D) in forward()),
    # so repeating the D-wide coef pattern B times aligns each lane with its
    # feature d.  Keep this in sync with forward()'s flatten.
    a3  = jnp.tile(coef[:, 0 * feat:1 * feat], (1, reps))   # e3
    c   = jnp.tile(coef[:, 1 * feat:2 * feat], (1, reps))   # e2 * e3
    ne1 = jnp.tile(coef[:, 2 * feat:3 * feat], (1, reps))   # -e1
    ne0 = jnp.tile(coef[:, 3 * feat:4 * feat], (1, reps))   # -e0
    arg = z.astype(jnp.float32) * a3 - c                    # affine kept in f32
    if o_ref.dtype == jnp.bfloat16:
        # bf16 tanh: ~2x EUP throughput on v6e/v7x (v5e upconverts, no gain).
        t = jnp.tanh(arg.astype(jnp.bfloat16)).astype(jnp.float32)
    else:
        t = jnp.tanh(arg)
    o_ref[...] = (ne1 * t + ne0).astype(o_ref.dtype)


def output_faults_pallas(z2, coef, *, target_block_bytes=1 << 20,
                         vmem_limit_bytes=32 << 20,
                         coef_resident_bytes=2 << 20,
                         coef_resident=None):
    """z2: [G, B*D] (G = M*N, rows b-major/d-minor); coef: [G, 4*D] f32 -> [G, B*D]."""
    G, BD = z2.shape
    assert coef.shape[0] == G and coef.shape[1] % 4 == 0
    feat = coef.shape[1] // 4
    assert BD % feat == 0, "z2 last dim must be B * D (b-major, d-minor)"
    assert coef.dtype == jnp.float32

    # --- row-block size: ~1 MiB of z per block -------------------------------
    row_bytes = BD * z2.dtype.itemsize
    gb = max(8, (int(target_block_bytes) // max(row_bytes, 1)) // 8 * 8)
    G8 = ((G + 7) // 8) * 8
    gb = min(gb, G8)
    if G8 >= 64:
        # >= 8 grid steps (>= 4 per TC on v7x megacore) so each core can
        # double-buffer its z DMAs instead of exposing a full block transfer.
        gb = min(gb, max(8, (G8 // 8) // 8 * 8))
    elif G8 >= 16:
        gb = min(gb, max(8, (G8 // 2) // 8 * 8))   # >= 2 steps for megacore
    n_blocks = pl.cdiv(G8, gb)
    G_pad = n_blocks * gb

    if G_pad != G:  # pad (m,n)-rows so every grid block is fully in-bounds
        z2 = jnp.pad(z2, ((0, G_pad - G), (0, 0)))
        coef = jnp.pad(coef, ((0, G_pad - G), (0, 0)))

    if coef_resident is None:
        # lane-padded VMEM footprint of the whole coef table
        padded_lanes = ((coef.shape[1] + 127) // 128) * 128
        coef_resident = G_pad * padded_lanes * 4 <= coef_resident_bytes

    kernel = functools.partial(_output_faults_kernel, feat=feat,
                               resident_coef=bool(coef_resident))
    if coef_resident:
        # Constant block index => Pallas loads the coef table into VMEM once
        # and never re-DMAs it; the kernel indexes its row slab by program_id.
        coef_in = coef.reshape(n_blocks, gb, coef.shape[1])
        coef_spec = pl.BlockSpec((n_blocks, gb, coef.shape[1]),
                                 lambda g: (0, 0, 0))
    else:
        coef_in = coef
        coef_spec = pl.BlockSpec((gb, coef.shape[1]), lambda g: (g, 0))

    out = pl.pallas_call(
        kernel,
        out_shape=jax.ShapeDtypeStruct((G_pad, BD), z2.dtype),
        grid=(n_blocks,),
        in_specs=[pl.BlockSpec((gb, BD), lambda g: (g, 0)), coef_spec],
        out_specs=pl.BlockSpec((gb, BD), lambda g: (g, 0)),
        compiler_params=pltpu.CompilerParams(
            dimension_semantics=("parallel",),
            vmem_limit_bytes=vmem_limit_bytes),
    )(z2, coef_in)
    return out[:G] if G_pad != G else out


# ---------------------------------------------------------------------------
# InvRT module (JAX glue around the Pallas kernel).
# ---------------------------------------------------------------------------
class InvRT:
    def __init__(self, key, N_train=4, epsilon=0.05, hidden=32):
        self.N = N_train
        self.epsilon = epsilon
        # rt_ parameter (9 resistor/transistor sizing logits), deterministic
        self.rt_ = jnp.array([0.3, -0.2, 0.1, 0.5, -0.4, 0.25, -0.1, 0.15, 0.05],
                             dtype=jnp.float32)
        # min/max scalers (stand-ins for the .package contents), deterministic
        self.X_min = jnp.concatenate([jnp.full((9,), 1.0), jnp.full((3,), 0.1)]
                                     ).astype(jnp.float32)
        self.X_max = jnp.concatenate([jnp.full((9,), 10.0), jnp.full((3,), 10.0)]
                                     ).astype(jnp.float32)
        self.Y_min = jnp.array([-1.0, -1.0, -0.5, 0.0], dtype=jnp.float32)
        self.Y_max = jnp.array([1.0, 0.0, 0.5, 5.0], dtype=jnp.float32)
        # synthetic eta_estimator: 12 -> hidden -> 4
        k1, k2 = jax.random.split(key)
        self.w1 = jax.random.normal(k1, (12, hidden), jnp.float32) * 0.3
        self.b1 = jnp.zeros((1, hidden), jnp.float32)
        self.w2 = jax.random.normal(k2, (hidden, 4), jnp.float32) * 0.3
        self.b2 = jnp.zeros((1, 4), jnp.float32)

    # ---- eta computation (mirrors RT / RT_noisy / RTn_extend / eta props) ----
    def _eta_raw(self, mask, noise_key, M, D):
        """Returns eta in kernel-friendly layout [M, N, 4, D]."""
        # torch indexes eta_fault[m-1] and would raise on codes outside [0,18];
        # validate host-side when the mask is concrete.
        try:
            mask_np = np.asarray(mask)
        except Exception:
            mask_np = None
        if mask_np is not None and (mask_np.min() < 0
                                    or mask_np.max() > ETA_FAULT.shape[0]):
            raise ValueError(f"fault codes must lie in [0, {ETA_FAULT.shape[0]}]")

        N = self.N
        rt_temp = jax.nn.sigmoid(self.rt_)
        RTn = jnp.zeros((12,), jnp.float32).at[:9].set(rt_temp)
        RT = RTn * (self.X_max - self.X_min) + self.X_min                # [12]
        # torch re-samples self.eta per (group, non-fault column); draw
        # independent noise per (m, d) accordingly.
        noise = (jax.random.uniform(noise_key, (M, D, N, 12), jnp.float32)
                 * 2.0 - 1.0) * self.epsilon + 1.0
        RT_noisy = RT[None, None, None, :] * noise                       # [M,D,N,12]
        ext = jnp.concatenate(
            [RT_noisy[..., 0:9],
             (RT_noisy[..., 3] / RT_noisy[..., 4])[..., None],
             (RT_noisy[..., 5] / RT_noisy[..., 6])[..., None],
             (RT_noisy[..., 7] / RT_noisy[..., 8])[..., None]], axis=-1)  # [M,D,N,12]
        rtn_ext = (ext - self.X_min) / (self.X_max - self.X_min)

        x = rtn_ext.reshape(M * D * N, 12)
        # Tiny MLP (K=12, hidden=32, out=4): left to XLA — shapes cannot feed
        # the MXU, a dedicated Pallas call would be pure launch overhead.
        eta_n = jax.nn.sigmoid(jnp.tanh(x @ self.w1 + self.b1) @ self.w2 + self.b2)
        eta_learned = (eta_n * (self.Y_max - self.Y_min) + self.Y_min
                       ).reshape(M, D, N, 4)

        # fault override per (m, d) feature
        fault_eta = ETA_FAULT[jnp.clip(mask - 1, 0, ETA_FAULT.shape[0] - 1)]   # [M,D,4]
        is_fault = (mask > 0)[:, :, None, None]                                # [M,D,1,1]
        eta_mdn4 = jnp.where(is_fault, fault_eta[:, :, None, :], eta_learned)  # [M,D,N,4]
        return jnp.transpose(eta_mdn4, (0, 2, 3, 1))                           # [M,N,4,D]

    @staticmethod
    def _fold_coef(eta):
        """[M,N,4,D] -> [M*N, 4*D], planes lane-concatenated (e3 | e2*e3 | -e1 | -e0)."""
        M, N, _, D = eta.shape
        e0, e1, e2, e3 = eta[:, :, 0], eta[:, :, 1], eta[:, :, 2], eta[:, :, 3]
        coef = jnp.concatenate([e3, e2 * e3, -e1, -e0], axis=-1)   # [M, N, 4*D]
        return coef.reshape(M * N, 4 * D).astype(jnp.float32)

    # ---- forward (Pallas hot path) ----
    def forward(self, z, mask, noise_key, *, force_pallas=False,
                coef_resident=None, min_pallas_bytes=4 << 20):
        M, N, B, D = z.shape
        assert N == self.N and mask.shape == (M, D)
        eta = self._eta_raw(mask, noise_key, M, D)            # [M, N, 4, D]

        if not force_pallas and z.size * z.dtype.itemsize < min_pallas_bytes:
            # tiny problems: fused XLA elementwise beats pallas_call overhead
            e0, e1, e2, e3 = (eta[:, :, i][:, :, None, :] for i in range(4))
            return -(e0 + e1 * jnp.tanh((z - e2) * e3))

        coef = self._fold_coef(eta)                           # [M*N, 4*D] f32

        # Pad B so the flattened last dim B*D is a multiple of 128
        # (keeps output stores lane-dense / unmasked vst).
        if (B * D) % 128 != 0:
            k = 128 // math.gcd(D, 128)
            B_pad = ((B + k - 1) // k) * k
            z = jnp.pad(z, ((0, 0), (0, 0), (0, B_pad - B), (0, 0)))
        else:
            B_pad = B

        # Lane-dense flatten; last dim is b-major / d-minor, matching the
        # kernel's jnp.tile(coef_plane, (1, B_pad)).
        z2 = z.reshape(M * N, B_pad * D)
        out2 = output_faults_pallas(z2, coef, coef_resident=coef_resident)
        out = out2.reshape(M, N, B_pad, D)
        return out[:, :, :B, :] if B_pad != B else out

    # ---- pure-JAX reference for validation (original unfolded formula) ----
    def reference(self, z, mask, noise_key):
        M, N, B, D = z.shape
        eta = self._eta_raw(mask, noise_key, M, D)            # [M, N, 4, D]
        e0, e1, e2, e3 = (eta[:, :, i][:, :, None, :] for i in range(4))
        return -(e0 + e1 * jnp.tanh((z - e2) * e3))


# ---------------------------------------------------------------------------
if __name__ == "__main__":
    key = jax.random.PRNGKey(0)
    k_z, k_init, k_noise = jax.random.split(key, 3)

    # mask groups, N_train, batch rows, features; B*D = 128 (fully lane-dense),
    # M*N = 16 rows -> 2 grid steps of 8 rows (megacore-splittable).
    M, N, B, D = 2, 8, 16, 8
    z = jax.random.normal(k_z, (M, N, B, D), dtype=jnp.float32)
    # fault mask per (group, feature): 0 = no fault, 1..18 index ETA_FAULT rows
    mask = jnp.array([[0, 3, 0, 7, 0, 0, 12, 0],
                      [1, 0, 0, 0, 18, 0, 0, 5]], dtype=jnp.int32)

    model = InvRT(k_init, N_train=N, epsilon=0.05, hidden=32)
    ref = model.reference(z, mask, k_noise)

    # f32, VMEM-resident coef path (default for small/medium G)
    out = jax.block_until_ready(model.forward(z, mask, k_noise, force_pallas=True))
    assert out.shape == (M, N, B, D)
    np.testing.assert_allclose(np.asarray(out), np.asarray(ref),
                               rtol=1e-4, atol=1e-4)

    # f32, block-streamed coef path (used when the coef table exceeds VMEM budget)
    out_blk = jax.block_until_ready(
        model.forward(z, mask, k_noise, force_pallas=True, coef_resident=False))
    np.testing.assert_allclose(np.asarray(out_blk), np.asarray(ref),
                               rtol=1e-4, atol=1e-4)

    # bf16 I/O + bf16 tanh (the v6e/v7x fast path); loose tolerance — bf16 tanh
    # on near-saturated args scaled by |e1|~184 costs up to ~0.4 absolute.
    out_bf = jax.block_until_ready(
        model.forward(z.astype(jnp.bfloat16), mask, k_noise, force_pallas=True))
    assert out_bf.dtype == jnp.bfloat16
    np.testing.assert_allclose(np.asarray(out_bf.astype(jnp.float32)),
                               np.asarray(ref), rtol=0.1, atol=1.0)

    # tiny-problem dispatch: below ~4 MiB the wrapper uses fused XLA instead.
    out_xla = model.forward(z, mask, k_noise, force_pallas=False)
    np.testing.assert_allclose(np.asarray(out_xla), np.asarray(ref),
                               rtol=1e-6, atol=1e-6)

    print("KERNEL_OK")
</pallas_src>

<mosaic_0001>
module attributes {stable_mosaic.version = 11 : i64} {
  func.func @_output_faults_kernel(%arg0: i32, %arg1: memref<8x128xf32, #tpu.memory_space<vmem>>, %arg2: memref<2x8x32xf32, #tpu.memory_space<vmem>>, %arg3: memref<8x128xf32, #tpu.memory_space<vmem>>) attributes {dimension_semantics = [#tpu.dimension_semantics<parallel>], iteration_bounds = array<i64: 2>, scalar_prefetch = 0 : i64, scratch_operands = 0 : i64, tpu.core_type = #tpu.core_type<tc>, window_params = [{transform_indices = @transform_0, window_bounds = array<i64: 8, 128>}, {pipeline_mode = #tpu.pipeline_mode<synchronous>, transform_indices = @transform_1, window_bounds = array<i64: 2, 8, 32>}, {transform_indices = @transform_2, window_bounds = array<i64: 8, 128>}]} {
    %0 = arith.index_cast %arg0 : i32 to index
    %c0 = arith.constant 0 : index
    %c0_0 = arith.constant 0 : index
    %1 = vector.load %arg2[%0, %c0, %c0_0] : memref<2x8x32xf32, #tpu.memory_space<vmem>>, vector<1x8x32xf32>
    %2 = vector.shape_cast %1 : vector<1x8x32xf32> to vector<8x32xf32>
    %c0_1 = arith.constant 0 : index
    %c0_2 = arith.constant 0 : index
    %3 = vector.load %arg1[%c0_1, %c0_2] : memref<8x128xf32, #tpu.memory_space<vmem>>, vector<8x128xf32>
    %4 = vector.extract_strided_slice %2 {offsets = [0, 0], sizes = [8, 8], strides = [1, 1]} : vector<8x32xf32> to vector<8x8xf32>
    %5 = tpu.concatenate %4, %4, %4, %4, %4, %4, %4, %4, %4, %4, %4, %4, %4, %4, %4, %4 in 1 : vector<8x8xf32>, vector<8x8xf32>, vector<8x8xf32>, vector<8x8xf32>, vector<8x8xf32>, vector<8x8xf32>, vector<8x8xf32>, vector<8x8xf32>, vector<8x8xf32>, vector<8x8xf32>, vector<8x8xf32>, vector<8x8xf32>, vector<8x8xf32>, vector<8x8xf32>, vector<8x8xf32>, vector<8x8xf32> -> vector<8x128xf32>
    %6 = vector.extract_strided_slice %2 {offsets = [0, 8], sizes = [8, 8], strides = [1, 1]} : vector<8x32xf32> to vector<8x8xf32>
    %7 = tpu.concatenate %6, %6, %6, %6, %6, %6, %6, %6, %6, %6, %6, %6, %6, %6, %6, %6 in 1 : vector<8x8xf32>, vector<8x8xf32>, vector<8x8xf32>, vector<8x8xf32>, vector<8x8xf32>, vector<8x8xf32>, vector<8x8xf32>, vector<8x8xf32>, vector<8x8xf32>, vector<8x8xf32>, vector<8x8xf32>, vector<8x8xf32>, vector<8x8xf32>, vector<8x8xf32>, vector<8x8xf32>, vector<8x8xf32> -> vector<8x128xf32>
    %8 = vector.extract_strided_slice %2 {offsets = [0, 16], sizes = [8, 8], strides = [1, 1]} : vector<8x32xf32> to vector<8x8xf32>
    %9 = tpu.concatenate %8, %8, %8, %8, %8, %8, %8, %8, %8, %8, %8, %8, %8, %8, %8, %8 in 1 : vector<8x8xf32>, vector<8x8xf32>, vector<8x8xf32>, vector<8x8xf32>, vector<8x8xf32>, vector<8x8xf32>, vector<8x8xf32>, vector<8x8xf32>, vector<8x8xf32>, vector<8x8xf32>, vector<8x8xf32>, vector<8x8xf32>, vector<8x8xf32>, vector<8x8xf32>, vector<8x8xf32>, vector<8x8xf32> -> vector<8x128xf32>
    %10 = vector.extract_strided_slice %2 {offsets = [0, 24], sizes = [8, 8], strides = [1, 1]} : vector<8x32xf32> to vector<8x8xf32>
    %11 = tpu.concatenate %10, %10, %10, %10, %10, %10, %10, %10, %10, %10, %10, %10, %10, %10, %10, %10 in 1 : vector<8x8xf32>, vector<8x8xf32>, vector<8x8xf32>, vector<8x8xf32>, vector<8x8xf32>, vector<8x8xf32>, vector<8x8xf32>, vector<8x8xf32>, vector<8x8xf32>, vector<8x8xf32>, vector<8x8xf32>, vector<8x8xf32>, vector<8x8xf32>, vector<8x8xf32>, vector<8x8xf32>, vector<8x8xf32> -> vector<8x128xf32>
    %12 = arith.mulf %3, %5 : vector<8x128xf32>
    %13 = arith.subf %12, %7 : vector<8x128xf32>
    %14 = math.tanh %13 : vector<8x128xf32>
    %15 = arith.mulf %9, %14 : vector<8x128xf32>
    %16 = arith.addf %15, %11 : vector<8x128xf32>
    %c0_3 = arith.constant 0 : index
    %c0_4 = arith.constant 0 : index
    %17 = vector.load %arg3[%c0_3, %c0_4] : memref<8x128xf32, #tpu.memory_space<vmem>>, vector<8x128xf32>
    tpu.vector_store %arg3[%c0_3, %c0_4], %16 {strides = array<i32>} : memref<8x128xf32, #tpu.memory_space<vmem>>, vector<8x128xf32>,
    return
  }
  func.func @transform_0(%arg0: i32) -> (i32, i32) {
    %c0_i32 = arith.constant 0 : i32
    %c0_i32_0 = arith.constant 0 : i32
    return %arg0, %c0_i32 : i32, i32
  }
  func.func @transform_1(%arg0: i32) -> (i32, i32, i32) {
    %c0_i32 = arith.constant 0 : i32
    %c0_i32_0 = arith.constant 0 : i32
    %c0_i32_1 = arith.constant 0 : i32
    %c0_i32_2 = arith.constant 0 : i32
    return %c0_i32, %c0_i32_0, %c0_i32_1 : i32, i32, i32
  }
  func.func @transform_2(%arg0: i32) -> (i32, i32) {
    %c0_i32 = arith.constant 0 : i32
    %c0_i32_0 = arith.constant 0 : i32
    return %arg0, %c0_i32 : i32, i32
  }
}

</mosaic_0001>

<bundles_post_ra>
// kernel: tpu_custom_call.1
= control target key start
LH: loop header
LB: loop body
LE: loop exit
PB: predicated region body
PF: predicated region fallthrough
CT: control target
= control target key end

     0   :  { %7 = vsyncpa [#allocation3], 0  ;;  %s924_s0 = inlined_call_operand.hbm [shape: f32[16,128], index: 0, kind: input, shape index: {}]   ;;  %s925_s1 = inlined_call_operand.hbm [shape: f32[2,8,32], index: 1, kind: input, shape index: {}]   ;;  %s926_s2 = inlined_call_operand.hbm [shape: f32[16,128], index: 2, kind: output, shape index: {}]  }
   0x1   :  { %9 = vsyncpa [#allocation3 + $0x1], 0 }
   0x2   :  { %10 = vsyncpa [#allocation6], 0 }
   0x3   :  { %11 = vsyncpa [#allocation4], 0 }
   0x4   :  { %13 = vsyncpa [#allocation4 + $0x1], 0  ;;  %s651_s9 = smov 0   ;;  %s653_s10 = smov 0  }
   0x5   :  { %s655_s11 = smov 0   ;;  %s657_s12 = smov 0  }
   0x6 LB: > { %s672_s13 = sadd.s32 4294967295, %s614_s12   ;;  %s401_s14 = sadd.s32 4294967294, %s614_s12   ;;  %s614_s12 = sphi %s657_s12, %s948_s12   ;;  %s610_s11 = sphi %s655_s11, %s947_s11   ;;  %s606_s10 = sphi %s653_s10, %s946_s10   ;;  %s602_s9 = sphi %s651_s9, %s945_s9  }
   0x7   : > { %p39_p0 = scmp.ne.s32.totalorder %s606_s10, %s602_s9  ;;  %p927_p1 = scmp.eq.s32.totalorder %s672_s13, 0 }
   0x8   : > { %p90_p3 = scmp.eq.s32.totalorder %s401_s14, 1  ;;  %p402_p5 = scmp.ge.s32.totalorder %s614_s12, 1 }
   0x9   : > { %p681_p4 = por %p927_p1, %p39_p0  ;;  %p97_p7 = scmp.lt.s32.totalorder %s614_s12, 3 }
   0xa   : > { %p686_p6 = por %p90_p3, %p39_p0  ;;  %s616_s18 = smov [#allocation5]  }
   0xb   : > { %s931_s15 = scalar_select %p681_p4, 1, 0 }
   0xc   : > { %s932_s16 = scalar_select %p686_p6, 1, 0 }
   0xd   : > { %p691_p8 = pnand %p402_p5, %p97_p7  ;;  %s109_s19 = sshll.u32 %s616_s18, 4  ;;  %s110_s19 = int_to_ptr.vmem [resolvable:$true] %s109_s19 }
   0xe   : > { %s705_s21 = sadd.s32 1, %s614_s12   ;;  %s26_s22 = sadd.s32 1, %s610_s11 }
   0xf   : > { %s933_s17 = scalar_select %p691_p8, 1, 0 }
  0x10   : > { %p424_p9 = pneg %p691_p8  ;;  %s23_s23 = ssub.s32 %s614_s12, %s705_s21 }
  0x11   : > { %s503_s24 = scalar_lea.vmem %s110_s19, 256  ;;  %p511_p5 = scmp.lt.s32.totalorder %s110_s19, %s110_s19 }
  0x12   : > { %p700_p11 = pnand %p424_p9, %p927_p1  ;;  %p504_p13 = scmp.ne.s32.totalorder %s110_s19, %s503_s24 }
  0x13   : > { %p512_p7 = scmp.lt.s32.totalorder %s503_s24, %s503_s24 }
  0x14   : > { %p494_p12 = pneg %p700_p11 }
  0x15   : > { %p513_p10 = por %p512_p7, %p511_p5 }
  0x16   : > { %p506_p0 = pnand %p504_p13, %p494_p12 }
  0x18   : > { %p507_p3 = pneg %p506_p0 }
  0x1a   : > { %p514_p2 = pnand %p513_p10, %p507_p3 }
  0x1c   : > { %517 = shalt.err (!%p514_p2)
}
  0x1d   : > { %s617_s25 = smov 128   ;;  %s618_s26 = smov 8  }
  0x1e   : > { %427 = dma.hbm_to_vmem [thread:$0]  (!%p700_p11), %s925_s1, 256, %s110_s19, [#allocation6], %s617_s25, %s617_s25, %s618_s26  }
  0x1f   : > { %p24_p9 = scmp.eq.s32.totalorder %s23_s23, 0  ;;  %p33_p12 = scmp.ne.s32.totalorder %s610_s11, %s606_s10 }
  0x20   : > { %p34_p10 = scmp.eq.s32.totalorder %s614_s12, 0  ;;  %p437_p2 = scmp.lt.s32.totalorder %s614_s12, 2 }
  0x21   : > { %s722_s29 = scalar_select %p24_p9, %s610_s11, %s26_s22  }
  0x22   : > { %p35_p13 = por %p34_p10, %p33_p12  ;;  %p935_p0 = scmp.eq.s32.totalorder %s672_s13, 1 }
  0x23   : > { %s123_s3 = sand.u32 1, %s610_s11   ;;  %s406_s4 = sshll.u32 %s614_s12, 7 }
  0x24   : > { %p726_p3 = por %p935_p0, %p33_p12  ;;  %s405_s5 = sshll.u32 %s123_s3, 3 }
  0x25   : > { %s735_s8 = scalar_lea.hbm %s924_s0, %s406_s4  ;;  %s127_s14 = scalar_lea.vmem [#allocation2], %s405_s5 }
  0x26   : > { %s936_s30 = scalar_select %p726_p3, 1, 0 }
  0x27   : > { %s134_s18 = sshll.u32 %s127_s14, 4  ;;  %p737_p11 = pnand %p437_p2, %p35_p13  ;;  %s135_s18 = int_to_ptr.vmem [resolvable:$true] %s134_s18 }
  0x28   : > { %s124_s20 = scalar_lea.sflag [#allocation3], %s123_s3  ;;  %s518_s22 = scalar_lea.hbm %s735_s8, 128 }
  0x29   : > { %p519_p5 = scmp.ne.s32.totalorder %s735_s8, %s518_s22  ;;  %p520_p7 = pneg %p737_p11 }
  0x2a   : > { %s523_s25 = scalar_lea.hbm %s924_s0, 256  ;;  %p524_p10 = scmp.lt.s32.totalorder %s735_s8, %s924_s0 }
  0x2b   : > { %p521_p9 = pnand %p520_p7, %p519_p5  ;;  %p525_p2 = scmp.lt.s32.totalorder %s523_s25, %s518_s22 }
  0x2d   : > { %p522_p12 = pneg %p521_p9  ;;  %p526_p13 = por %p525_p2, %p524_p10 }
  0x2f   : > { %p527_p0 = pnand %p526_p13, %p522_p12 }
  0x31   : > { %530 = shalt.err (!%p527_p0)
}
  0x32   : > { %s531_s28 = scalar_lea.vmem %s135_s18, 128  ;;  %s619_s3 = smov [#allocation2]  }
  0x33   : > { %p532_p1 = scmp.ne.s32.totalorder %s135_s18, %s531_s28  ;;  %s536_s4 = sshll.u32 %s619_s3, 4  ;;  %s537_s4 = int_to_ptr.vmem [resolvable:$false] %s536_s4 }
  0x34   : > { %s538_s5 = scalar_lea.vmem %s537_s4, 256  ;;  %p539_p5 = scmp.lt.s32.totalorder %s135_s18, %s537_s4 }
  0x35   : > { %p534_p6 = pnand %p532_p1, %p520_p7  ;;  %p540_p9 = scmp.lt.s32.totalorder %s538_s5, %s531_s28 }
  0x37   : > { %p535_p3 = pneg %p534_p6  ;;  %p541_p4 = por %p540_p9, %p539_p5 }
  0x39   : > { %p542_p8 = pnand %p541_p4, %p535_p3 }
  0x3b   : > { %545 = shalt.err (!%p542_p8)
}
  0x3c   : > { %431 = dma.hbm_to_vmem [thread:$0]  (!%p737_p11), %s735_s8, 128, %s135_s18, %s124_s20  }
  0x3d   : > { %p938_p12 = scmp.ne.s32.totalorder %s933_s17, 0 }
  0x3e   : > { %s758_s6 = sand.u32 (!%p938_p12), 1, %s606_s10   ;;  %p939_p1 = scmp.ne.s32.totalorder (!%p938_p12), %s931_s15, 0 }
  0x3f   : > { %143 = sbr.rel (%p938_p12) target bundleno = 255 (0xff), region = 28  ;;  %s408_s7 = sshll.u32 (!%p938_p12), %s758_s6, 3 }
  0x40   : > { %s146_s14 = scalar_lea.sflag (!%p938_p12), [#allocation3], %s758_s6  ;;  %s764_s22 = scalar_lea.vmem (!%p938_p12), [#allocation2], %s408_s7 }
  0x44   : > { %589 = dma.done.wait (%p939_p1), %s146_s14, 128  }
  0x45   : > { %591 = vsyncadd (%p939_p1), %s146_s14, 4294967168  ;;  %p940_p4 = scmp.eq.s32.totalorder %s672_s13, 0 }
  0x47   : > { %593 = dma.done.wait (%p940_p4), [#allocation6], 256   ;;  %p941_p6 = pmov %p940_p4 }
  0x48   : > { %s411_s17 = sshll.u32 %s672_s13, 3  ;;  %s620_s18 = smov 24   ;;  %vm224_vm0 = vcmask 64512   ;;  %vm226_vm1 = vcmask 130048   ;;  %vm228_vm2 = vcmask 195584   ;;  %vm230_vm3 = vcmask 261120  }
  0x49   : > { %595 = vsyncadd (%p941_p6), [#allocation6], 4294967040  ;;  %s175_s8 = scalar_lea.vmem [#allocation5], %s411_s17  ;;  %s621_s19 = smov 8   ;;  %vm232_vm4 = vcmask 326656   ;;  %vm234_vm5 = vcmask 392192  }
  0x4a   : > { %v775_v0 = vld [vmem:[%s175_s8] sm:$0xff]  ;;  %s622_s20 = smov 120   ;;  %s623_s15 = smov 16   ;;  %vm236_vm6 = vcmask 457728   ;;  %vm238_vm7 = vcmask 523264   ;;  %vm240_vm8 = vcmask 588800  }
  0x4b   : > { %185 = vrot.lane.b32.xlu1 %v775_v0, %s620_s18  ;;  %179 = vrot.lane.b32.xlu0 %v775_v0, %s621_s19  ;;  %s624_s23 = smov 32   ;;  %s625_s24 = smov 40   ;;  %vm242_vm9 = vcmask 654336   ;;  %vm244_vm10 = vcmask 719872   ;;  %vm246_vm11 = vcmask 785408   ;;  %vm248_vm12 = vcmask 850944  }
  0x4c   : > { %s626_s25 = smov 48   ;;  %s627_s26 = smov 56   ;;  %vm252_vm13 = vcmask 982016   ;;  %vm250_vm14 = vcmask 916480   ;;  %v177_v41 = vld [vmem:[%s764_s22] sm:$0xff] }
  0x4d   : > { %s628_s27 = smov 64   ;;  %s629_s28 = smov 72  }
  0x4e   : > { %s630_s3 = smov 80   ;;  %s631_s4 = smov 88  }
  0x4f   : > { %221 = vrot.lane.b32.xlu1 %v775_v0, %s622_s20  ;;  %182 = vrot.lane.b32.xlu0 %v775_v0, %s623_s15  ;;  %s632_s5 = smov 96   ;;  %s633_s14 = smov 104  }
  0x50   : > { %s634_s17 = smov 112   ;;  %s413_s22 = sshll.u32 %s672_s13, 7 }
  0x51   : > { %s173_s8 = scalar_lea.vmem [#allocation7], %s408_s7  ;;  %s317_s15 = scalar_lea.hbm %s926_s2, %s413_s22 }
  0x52   : > { %s319_s18 = sshll.u32 %s173_s8, 4  ;;  %p942_p3 = scmp.ne.s32.totalorder %s936_s30, 0  ;;  %s320_s18 = int_to_ptr.vmem [resolvable:$true] %s319_s18 }
  0x53   : > { %188 = vrot.lane.b32.xlu0 %v775_v0, %s624_s23  ;;  %191 = vrot.lane.b32.xlu1 %v775_v0, %s625_s24  ;;  %s306_s23 = scalar_lea.sflag [#allocation4], %s758_s6  ;;  %s546_s24 = scalar_lea.vmem %s320_s18, 128 }
  0x54   : > { %p547_p8 = scmp.ne.s32.totalorder %s320_s18, %s546_s24  ;;  %s635_s13 = smov [#allocation7]  }
  0x56   : > { %p548_p11 = pnand %p547_p8, %p942_p3 }
  0x57   : > { %194 = vrot.lane.b32.xlu0 %v775_v0, %s626_s25  ;;  %197 = vrot.lane.b32.xlu1 %v775_v0, %s627_s26  ;;  %s550_s25 = sshll.u32 %s635_s13, 4  ;;  %s551_s25 = int_to_ptr.vmem [resolvable:$false] %s550_s25 }
  0x58   : > { %p549_p7 = pneg %p548_p11  ;;  %s552_s7 = scalar_lea.vmem %s551_s25, 256 }
  0x59   : > { %p553_p10 = scmp.lt.s32.totalorder %s320_s18, %s551_s25  ;;  %p554_p2 = scmp.lt.s32.totalorder %s552_s7, %s546_s24 }
  0x5b   : > { %200 = vrot.lane.b32.xlu0 %v775_v0, %s628_s27  ;;  %203 = vrot.lane.b32.xlu1 %v775_v0, %s629_s28  ;;  %p555_p13 = por %p554_p2, %p553_p10 }
  0x5d   : > { %p556_p0 = pnand %p555_p13, %p549_p7 }
  0x5f   : > { %206 = vrot.lane.b32.xlu0 %v775_v0, %s630_s3  ;;  %209 = vrot.lane.b32.xlu1 %v775_v0, %s631_s4 }
  0x63   : > { %212 = vrot.lane.b32.xlu0 %v775_v0, %s632_s5  ;;  %215 = vrot.lane.b32.xlu1 %v775_v0, %s633_s14 }
  0x67   : > { %218 = vrot.lane.b32.xlu0 %v775_v0, %s634_s17 }
  0xbd   : > { %v792_v1 = vpop.permute.xlu1 %185  ;;  %v794_v2 = vpop.permute.xlu0 %179 }
  0xbe   : > { %v225_v3 = vsel %vm224_vm0, %v775_v0, %v794_v2 }
  0xc1   : > { %v222_v4 = vpop.permute.xlu1 %221  ;;  %v799_v5 = vpop.permute.xlu0 %182 }
  0xc2   : > { %v254_v6 = vsel %vm224_vm0, %v222_v4, %v775_v0  ;;  %v227_v7 = vsel %vm226_vm1, %v225_v3, %v799_v5 }
  0xc3   : > { %v255_v8 = vsel %vm226_vm1, %v254_v6, %v794_v2  ;;  %v229_v10 = vsel %vm228_vm2, %v227_v7, %v792_v1 }
  0xc4   : > { %v256_v9 = vsel %vm228_vm2, %v255_v8, %v799_v5 }
  0xc5   : > { %v811_v11 = vpop.permute.xlu0 %188  ;;  %v813_v12 = vpop.permute.xlu1 %191  ;;  %v257_v13 = vsel %vm230_vm3, %v256_v9, %v792_v1 }
  0xc6   : > { %v231_v14 = vsel %vm230_vm3, %v229_v10, %v811_v11  ;;  %v258_v15 = vsel %vm232_vm4, %v257_v13, %v811_v11 }
  0xc7   : > { %v233_v16 = vsel %vm232_vm4, %v231_v14, %v813_v12  ;;  %v259_v20 = vsel %vm234_vm5, %v258_v15, %v813_v12 }
  0xc9   : > { %v195_v17 = vpop.permute.xlu0 %194  ;;  %v198_v18 = vpop.permute.xlu1 %197 }
  0xca   : > { %v235_v19 = vsel %vm234_vm5, %v233_v16, %v195_v17  ;;  %v260_v21 = vsel %vm236_vm6, %v259_v20, %v195_v17 }
  0xcb   : > { %v237_v22 = vsel %vm236_vm6, %v235_v19, %v198_v18  ;;  %v261_v26 = vsel %vm238_vm7, %v260_v21, %v198_v18 }
  0xcd   : > { %v201_v23 = vpop.permute.xlu0 %200  ;;  %v204_v24 = vpop.permute.xlu1 %203 }
  0xce   : > { %v239_v25 = vsel %vm238_vm7, %v237_v22, %v201_v23  ;;  %v262_v27 = vsel %vm240_vm8, %v261_v26, %v201_v23 }
  0xcf   : > { %v241_v28 = vsel %vm240_vm8, %v239_v25, %v204_v24  ;;  %v263_v32 = vsel %vm242_vm9, %v262_v27, %v204_v24 }
  0xd1   : > { %v207_v29 = vpop.permute.xlu0 %206  ;;  %v210_v30 = vpop.permute.xlu1 %209 }
  0xd2   : > { %v243_v31 = vsel %vm242_vm9, %v241_v28, %v207_v29  ;;  %v264_v33 = vsel %vm244_vm10, %v263_v32, %v207_v29 }
  0xd3   : > { %v245_v34 = vsel %vm244_vm10, %v243_v31, %v210_v30  ;;  %v265_v38 = vsel %vm246_vm11, %v264_v33, %v210_v30 }
  0xd5   : > { %v213_v35 = vpop.permute.xlu0 %212  ;;  %v216_v36 = vpop.permute.xlu1 %215 }
  0xd6   : > { %v247_v37 = vsel %vm246_vm11, %v245_v34, %v213_v35  ;;  %v266_v40 = vsel %vm248_vm12, %v265_v38, %v213_v35 }
  0xd7   : > { %v249_v39 = vsel %vm248_vm12, %v247_v37, %v216_v36  ;;  %v267_v49 = vsel %vm250_vm14, %v266_v40, %v216_v36 }
  0xd9   : > { %v219_v42 = vpop.permute.xlu0 %218 }
  0xda   : > { %v251_v43 = vsel %vm250_vm14, %v249_v39, %v219_v42  ;;  %v269_v44 = vsel %vm224_vm0, %v219_v42, %v222_v4  ;;  %v284_v45 = vsel %vm224_vm0, %v216_v36, %v219_v42  ;;  %v268_v53 = vsel %vm252_vm13, %v267_v49, %v219_v42 }
  0xdb   : > { %v253_v46 = vsel %vm252_vm13, %v251_v43, %v222_v4  ;;  %v270_v47 = vsel %vm226_vm1, %v269_v44, %v775_v0  ;;  %v285_v48 = vsel %vm226_vm1, %v284_v45, %v222_v4 }
  0xdc   : > { %v271_v50 = vsel %vm228_vm2, %v270_v47, %v794_v2  ;;  %v286_v51 = vsel %vm228_vm2, %v285_v48, %v775_v0  ;;  %v299_v52 = vmul.f32 %v253_v46, %v177_v41 }
  0xdd   : > { %v272_v54 = vsel %vm230_vm3, %v271_v50, %v799_v5  ;;  %v287_v55 = vsel %vm230_vm3, %v286_v51, %v794_v2 }
  0xde   : > { %v273_v56 = vsel %vm232_vm4, %v272_v54, %v792_v1  ;;  %v288_v57 = vsel %vm232_vm4, %v287_v55, %v799_v5  ;;  %v300_v58 = vsub.f32 %v299_v52, %v268_v53 }
  0xdf   : > { %v274_v59 = vsel %vm234_vm5, %v273_v56, %v811_v11  ;;  %v289_v60 = vsel %vm234_vm5, %v288_v57, %v792_v1 }
  0xe0   : > { %v275_v61 = vsel %vm236_vm6, %v274_v59, %v813_v12  ;;  %v290_v62 = vsel %vm236_vm6, %v289_v60, %v811_v11  ;;  %490 = vtanh.f32 %v300_v58 }
  0xe1   : > { %v276_v63 = vsel %vm238_vm7, %v275_v61, %v195_v17  ;;  %v291_v0 = vsel %vm238_vm7, %v290_v62, %v813_v12 }
  0xe2   : > { %v277_v2 = vsel %vm240_vm8, %v276_v63, %v198_v18  ;;  %v292_v3 = vsel %vm240_vm8, %v291_v0, %v195_v17 }
  0xe3   : > { %v278_v1 = vsel %vm242_vm9, %v277_v2, %v201_v23  ;;  %v293_v4 = vsel %vm242_vm9, %v292_v3, %v198_v18 }
  0xe4   : > { %v279_v5 = vsel %vm244_vm10, %v278_v1, %v204_v24  ;;  %v294_v6 = vsel %vm244_vm10, %v293_v4, %v201_v23 }
  0xe5   : > { %v280_v7 = vsel %vm246_vm11, %v279_v5, %v207_v29  ;;  %v295_v8 = vsel %vm246_vm11, %v294_v6, %v204_v24 }
  0xe6   : > { %v281_v9 = vsel %vm248_vm12, %v280_v7, %v210_v30  ;;  %v296_v10 = vsel %vm248_vm12, %v295_v8, %v207_v29 }
  0xe7   : > { %v282_v11 = vsel %vm250_vm14, %v281_v9, %v213_v35  ;;  %v297_v12 = vsel %vm250_vm14, %v296_v10, %v210_v30 }
  0xe8   : > { %v283_v14 = vsel %vm252_vm13, %v282_v11, %v216_v36  ;;  %v298_v16 = vsel %vm252_vm13, %v297_v12, %v213_v35 }
  0xed   : > { %v491_v13 = vpop.eup %490 }
  0xee   : > { %v302_v15 = vmul.f32 %v491_v13, %v283_v14 }
  0xf0   : > { %v303_v17 = vadd.f32 %v302_v15, %v298_v16 }
  0xf2   : > { %304 = vst [vmem:[%s173_s8] sm:$0xff] %v303_v17 }
  0xf3   : > { %559 = shalt.err (!%p556_p0)
}
  0xf4   : > { %s560_s26 = scalar_lea.hbm %s317_s15, 128  ;;  %s564_s28 = scalar_lea.hbm %s926_s2, 256 }
  0xf5   : > { %p561_p5 = scmp.ne.s32.totalorder %s317_s15, %s560_s26  ;;  %p565_p1 = scmp.lt.s32.totalorder %s317_s15, %s926_s2 }
  0xf6   : > { %p566_p4 = scmp.lt.s32.totalorder %s564_s28, %s560_s26 }
  0xf7   : > { %p562_p9 = pnand %p561_p5, %p942_p3 }
  0xf8   : > { %p567_p6 = por %p566_p4, %p565_p1 }
  0xf9   : > { %p563_p12 = pneg %p562_p9 }
  0xfb   : > { %p568_p8 = pnand %p567_p6, %p563_p12 }
  0xfd   : > { %571 = shalt.err (!%p568_p8)
}
  0xfe   : > { %422 = dma.vmem_to_hbm [thread:$0]  (%p942_p3), %s320_s18, 128, %s317_s15, %s306_s23  }
  0xff PF: > { %s331_s5 = sand.u32 1, %s602_s9   ;;  %p943_p11 = scmp.ne.s32.totalorder %s932_s16, 0 }
 0x100   : > { %p944_p7 = scmp.ge.s32.totalorder %s614_s12, 2  ;;  %s332_s14 = scalar_lea.sflag [#allocation4], %s331_s5 }
 0x102   : > { %p433_p10 = pnand %p944_p7, %p943_p11 }
 0x104   : > { %p434_p2 = pneg %p433_p10 }
 0x106   : > { %597 = dma.done.wait (%p434_p2), %s332_s14, 128  }
 0x107   : > { %599 = vsyncadd (%p434_p2), %s332_s14, 4294967168  ;;  %p16_p13 = scmp.ge.s32.totalorder %s705_s21, 4   ;;  %s945_s9 = smov %s606_s10 }
 0x108   : > { %s946_s10 = smov %s610_s11  ;;  %s947_s11 = smov %s722_s29 }
 0x109   : > { %s948_s12 = smov %s705_s21  ;;  %18 = sbr.rel (!%p16_p13) target bundleno = 6 (0x6), region = 78 }
 0x10e   :  { %337 = vsyncpa [#allocation3], 1 }
 0x10f   :  { %339 = vsyncpa [#allocation3 + $0x1], 1 }
 0x110   :  { %340 = vsyncpa [#allocation6], 1 }
 0x111   :  { %341 = vsyncpa [#allocation4], 1 }
 0x112   :  { %343 = vsyncpa [#allocation4 + $0x1], 1 }

</bundles_post_ra>
